<compile_context>
chip_gen: v7x
topology: tpu7x:2x2x1
jax: 0.10.0
libtpu: 0.0.40
codegen_flags: <defaults>
</compile_context>

<pallas_src>
import functools

import jax
import jax.numpy as jnp
from jax.experimental import pallas as pl
from jax.experimental.pallas import tpu as pltpu


def _encoder_layer_kernel(
    q_ref, kv_ref, wq_ref, wk_ref, wv_ref, wfc_ref, gamma_ref, beta_ref,
    out_ref, attn_ref=None, *, n_head, eps,
):
    """One (batch, q-tile) grid step.

    q_ref   : (TQ, D)       f32   query rows (also the residual)
    kv_ref  : (Lk, D)       bf16  key/value rows
    wq_ref  : (H, D, d_k)   bf16  query projection, pre-scaled by 1/sqrt(d_k)
    wk_ref  : (H, D, d_k)   bf16
    wv_ref  : (H, D, d_v)   bf16
    wfc_ref : (H, d_v, D)   bf16  output projection split per head
    gamma_ref / beta_ref : (1, D) f32
    out_ref : (TQ, D)       f32
    attn_ref: (H, TQ, Lk)   pre-softmax scaled scores (optional output)
    """
    x = q_ref[...]                                   # (TQ, D) f32  residual
    kv = kv_ref[...]                                 # (Lk, D) bf16

    # ---- LayerNorm(q_input) in f32 (only q is normalized in the reference) --
    mean = jnp.mean(x, axis=-1, keepdims=True)
    cent = x - mean
    var = jnp.mean(cent * cent, axis=-1, keepdims=True)
    xn = cent * jax.lax.rsqrt(var + eps)
    xn = (xn * gamma_ref[0] + beta_ref[0]).astype(jnp.bfloat16)

    tq = x.shape[0]
    lk = kv.shape[0]
    d = xn.shape[-1]

    # ---- Head-batched projections + ReLU (bf16 MXU, f32 accumulation) -------
    # Weights are pre-split per head, so Q/K/V are born in (H, L, d) layout:
    # no in-kernel slicing / transposes of activations.
    xn_h = jnp.broadcast_to(xn, (n_head, tq, d))
    kv_h = jnp.broadcast_to(kv, (n_head, lk, d))
    q3 = jnp.maximum(jnp.einsum('hqe,hed->hqd', xn_h, wq_ref[...],
                                preferred_element_type=jnp.float32), 0.0)
    k3 = jnp.maximum(jnp.einsum('hke,hed->hkd', kv_h, wk_ref[...],
                                preferred_element_type=jnp.float32), 0.0)
    v3 = jnp.maximum(jnp.einsum('hke,hed->hkd', kv_h, wv_ref[...],
                                preferred_element_type=jnp.float32), 0.0)

    # ---- Scores: (Q / sqrt(d_k)) @ K^T, heads batched, no explicit .T -------
    # (1/sqrt(d_k) is already folded into Wq on the host.)
    scores = jnp.einsum('hqd,hkd->hqk',
                        q3.astype(jnp.bfloat16), k3.astype(jnp.bfloat16),
                        preferred_element_type=jnp.float32)    # (H, TQ, Lk)
    if attn_ref is not None:
        attn_ref[...] = scores.astype(attn_ref.dtype)          # single bulk store

    # ---- Softmax over keys (EUP exp + approx reciprocal) --------------------
    m = jnp.max(scores, axis=-1, keepdims=True)
    e = jnp.exp(scores - m)
    p = e * pl.reciprocal(jnp.sum(e, axis=-1, keepdims=True), approx=True)

    # ---- P @ V and per-head output projection (sum over heads, no concat) ---
    o3 = jnp.einsum('hqk,hkd->hqd',
                    p.astype(jnp.bfloat16), v3.astype(jnp.bfloat16),
                    preferred_element_type=jnp.float32)        # (H, TQ, d_v)
    partial = jnp.einsum('hqd,hde->hqe',
                         o3.astype(jnp.bfloat16), wfc_ref[...],
                         preferred_element_type=jnp.float32)   # (H, TQ, D)
    out_ref[...] = jnp.sum(partial, axis=0) + x


def _pick_q_tile(lq, n_head, lk, d_model, attn_itemsize,
                 vmem_budget_bytes=24 << 20):
    """Largest multiple-of-8 q-tile dividing Lq whose per-step working set
    (scores + exp + probs + double-buffered blocks) fits the VMEM budget.
    The budget is kept well under v7x's 64 MiB physical VMEM."""
    def step_bytes(tq):
        scores = 3 * n_head * tq * lk * 4                       # scores/e/p f32
        attn_out = 2 * n_head * tq * lk * attn_itemsize         # double-buffered
        io = 2 * (tq * d_model * 4 * 2 + lk * d_model * 2)      # q/out/kv blocks
        return scores + attn_out + io

    candidates = [t for t in range(8, min(lq, 1024) + 1, 8) if lq % t == 0]
    if not candidates:
        return lq                                               # tiny / odd Lq
    fitting = [t for t in candidates if step_bytes(t) <= vmem_budget_bytes]
    return max(fitting) if fitting else min(candidates)


def encoder_layer_forward(q_input, v_input, params, *, n_head, d_k, d_v,
                          eps=1e-6, with_attn=True, attn_dtype=jnp.float32,
                          q_tile=None):
    """q_input: (B, Lq, D), v_input: (B, Lk, D).

    Returns (enc_output, attn) if with_attn else enc_output.
    """
    B, Lq, D = q_input.shape
    _, Lk, _ = v_input.shape
    wq, wk, wv, wfc, gamma, beta = params

    # ---- Host-side prep: bf16, head-major weights, fold 1/sqrt(d_k) into Wq --
    temperature = d_k ** 0.5
    wq3 = jnp.transpose((wq * (1.0 / temperature)).reshape(D, n_head, d_k),
                        (1, 0, 2)).astype(jnp.bfloat16)          # (H, D, d_k)
    wk3 = jnp.transpose(wk.reshape(D, n_head, d_k), (1, 0, 2)).astype(jnp.bfloat16)
    wv3 = jnp.transpose(wv.reshape(D, n_head, d_v), (1, 0, 2)).astype(jnp.bfloat16)
    wfc3 = wfc.reshape(n_head, d_v, D).astype(jnp.bfloat16)      # (H, d_v, D)
    gamma2 = gamma.reshape(1, D).astype(jnp.float32)
    beta2 = beta.reshape(1, D).astype(jnp.float32)
    q_f32 = q_input.astype(jnp.float32)        # f32: LayerNorm + residual path
    kv_bf16 = v_input.astype(jnp.bfloat16)     # bf16: halves K/V HBM traffic

    attn_itemsize = jnp.dtype(attn_dtype).itemsize if with_attn else 0
    TQ = q_tile if q_tile is not None else _pick_q_tile(
        Lq, n_head, Lk, D, attn_itemsize)
    assert Lq % TQ == 0, "q_tile must divide Lq"
    num_q_tiles = Lq // TQ

    kernel = functools.partial(_encoder_layer_kernel, n_head=n_head, eps=eps)

    in_specs = [
        pl.BlockSpec((pl.Squeezed(), TQ, D), lambda b, t: (b, t, 0)),   # q
        pl.BlockSpec((pl.Squeezed(), Lk, D), lambda b, t: (b, 0, 0)),   # kv
        pl.BlockSpec((n_head, D, d_k), lambda b, t: (0, 0, 0)),         # Wq/temp
        pl.BlockSpec((n_head, D, d_k), lambda b, t: (0, 0, 0)),         # Wk
        pl.BlockSpec((n_head, D, d_v), lambda b, t: (0, 0, 0)),         # Wv
        pl.BlockSpec((n_head, d_v, D), lambda b, t: (0, 0, 0)),         # Wfc
        pl.BlockSpec((1, D), lambda b, t: (0, 0)),                      # gamma
        pl.BlockSpec((1, D), lambda b, t: (0, 0)),                      # beta
    ]
    enc_spec = pl.BlockSpec((pl.Squeezed(), TQ, D), lambda b, t: (b, t, 0))
    enc_shape = jax.ShapeDtypeStruct((B, Lq, D), jnp.float32)
    if with_attn:
        out_specs = [
            enc_spec,
            pl.BlockSpec((pl.Squeezed(), n_head, TQ, Lk),
                         lambda b, t: (b, 0, t, 0)),
        ]
        out_shape = (enc_shape,
                     jax.ShapeDtypeStruct((B, n_head, Lq, Lk), attn_dtype))
    else:
        out_specs = enc_spec
        out_shape = enc_shape

    # Advisory cost estimate for XLA's scheduler.
    flops = 2 * B * (
        Lq * D * n_head * d_k + Lk * D * n_head * d_k + Lk * D * n_head * d_v
        + n_head * Lq * Lk * d_k + n_head * Lq * Lk * d_v
        + Lq * n_head * d_v * D)
    transcendentals = B * n_head * Lq * (Lk + 1)          # exp + reciprocal
    bytes_accessed = (
        B * Lq * D * 4 + B * Lk * D * 2
        + 2 * (wq3.size + wk3.size + wv3.size + wfc3.size)
        + 2 * D * 4
        + B * Lq * D * 4
        + (B * n_head * Lq * Lk * attn_itemsize if with_attn else 0))
    cost = pl.CostEstimate(flops=int(flops),
                           transcendentals=int(transcendentals),
                           bytes_accessed=int(bytes_accessed))

    # Explicit VMEM budget (keeps double-buffering alive; capped for v7x).
    weight_bytes = 2 * (wq3.size + wk3.size + wv3.size + wfc3.size)
    step_bytes = (
        2 * (TQ * D * 4 + Lk * D * 2 + TQ * D * 4)
        + (2 * n_head * TQ * Lk * attn_itemsize if with_attn else 0)
        + 2 * weight_bytes
        + 6 * n_head * TQ * Lk * 4
        + 4 * n_head * (TQ + 2 * Lk) * max(d_k, d_v) * 4)
    vmem_limit = int(min(64 * 2**20, max(32 * 2**20, 2 * step_bytes)))

    grid_spec = pltpu.PrefetchScalarGridSpec(
        num_scalar_prefetch=0,
        grid=(B, num_q_tiles),
        in_specs=in_specs,
        out_specs=out_specs,
    )

    return pl.pallas_call(
        kernel,
        grid_spec=grid_spec,
        out_shape=out_shape,
        compiler_params=pltpu.CompilerParams(
            dimension_semantics=("parallel", "parallel"),
            vmem_limit_bytes=vmem_limit),
        cost_estimate=cost,
    )(q_f32, kv_bf16, wq3, wk3, wv3, wfc3, gamma2, beta2)


def _reference_forward(q_input, v_input, params, *, n_head, d_k, d_v, eps=1e-6):
    """Plain-JAX f32 reference mirroring the PyTorch module (eval mode)."""
    wq, wk, wv, wfc, gamma, beta = params
    B, Lq, D = q_input.shape
    Lk = v_input.shape[1]
    residual = q_input
    mean = jnp.mean(q_input, axis=-1, keepdims=True)
    var = jnp.mean((q_input - mean) ** 2, axis=-1, keepdims=True)
    xn = (q_input - mean) / jnp.sqrt(var + eps) * gamma[0] + beta[0]
    q = jax.nn.relu(xn @ wq).reshape(B, Lq, n_head, d_k).transpose(0, 2, 1, 3)
    k = jax.nn.relu(v_input @ wk).reshape(B, Lk, n_head, d_k).transpose(0, 2, 1, 3)
    v = jax.nn.relu(v_input @ wv).reshape(B, Lk, n_head, d_v).transpose(0, 2, 1, 3)
    attn = jnp.einsum("bhqd,bhkd->bhqk", q / (d_k ** 0.5), k)
    p = jax.nn.softmax(attn, axis=-1)
    o = jnp.einsum("bhqk,bhkd->bhqd", p, v)
    o = o.transpose(0, 2, 1, 3).reshape(B, Lq, n_head * d_v)
    enc = o @ wfc + residual
    return enc, attn


if __name__ == "__main__":
    # Small, module-consistent shapes.
    B, Lq, Lk = 2, 8, 8
    d_model, d_inner = 32, 64   # d_inner unused by EncoderLayer.forward
    n_head, d_k, d_v = 2, 16, 16

    key = jax.random.PRNGKey(0)
    kq, kk, kv_, kfc, kx, ky = jax.random.split(key, 6)

    # Deterministic synthetic parameters (module __init__ shapes).
    wq = 0.1 * jax.random.normal(kq, (d_model, n_head * d_k), jnp.float32)
    wk = 0.1 * jax.random.normal(kk, (d_model, n_head * d_k), jnp.float32)
    wv = 0.1 * jax.random.normal(kv_, (d_model, n_head * d_v), jnp.float32)
    wfc = 0.1 * jax.random.normal(kfc, (n_head * d_v, d_model), jnp.float32)
    gamma = jnp.ones((1, d_model), jnp.float32)
    beta = jnp.zeros((1, d_model), jnp.float32)
    params = (wq, wk, wv, wfc, gamma, beta)

    q_input = jax.random.normal(kx, (B, Lq, d_model), jnp.float32)
    v_input = jax.random.normal(ky, (B, Lk, d_model), jnp.float32)

    # Full variant (enc + pre-softmax attention).
    enc_out, attn = encoder_layer_forward(
        q_input, v_input, params, n_head=n_head, d_k=d_k, d_v=d_v)
    jax.block_until_ready((enc_out, attn))

    # Attention-free variant (skips the scores writeback entirely).
    enc_only = encoder_layer_forward(
        q_input, v_input, params, n_head=n_head, d_k=d_k, d_v=d_v,
        with_attn=False)
    jax.block_until_ready(enc_only)

    ref_enc, ref_attn = _reference_forward(
        q_input, v_input, params, n_head=n_head, d_k=d_k, d_v=d_v)

    # bf16 MXU operands + approx reciprocal -> compare with a bf16-level tol.
    assert jnp.allclose(enc_out, ref_enc, atol=2e-2, rtol=2e-2)
    assert jnp.allclose(attn, ref_attn, atol=2e-2, rtol=2e-2)
    assert jnp.allclose(enc_only, ref_enc, atol=2e-2, rtol=2e-2)

    print("KERNEL_OK")
</pallas_src>

<mosaic_0001>
module attributes {stable_mosaic.version = 11 : i64} {
  func.func @_encoder_layer_kernel(%arg0: i32, %arg1: i32, %arg2: memref<1x8x32xf32, #tpu.memory_space<vmem>>, %arg3: memref<1x8x32xbf16, #tpu.memory_space<vmem>>, %arg4: memref<2x32x16xbf16, #tpu.memory_space<vmem>>, %arg5: memref<2x32x16xbf16, #tpu.memory_space<vmem>>, %arg6: memref<2x32x16xbf16, #tpu.memory_space<vmem>>, %arg7: memref<2x16x32xbf16, #tpu.memory_space<vmem>>, %arg8: memref<1x32xf32, #tpu.memory_space<vmem>>, %arg9: memref<1x32xf32, #tpu.memory_space<vmem>>, %arg10: memref<1x8x32xf32, #tpu.memory_space<vmem>>, %arg11: memref<1x2x8x8xf32, #tpu.memory_space<vmem>>) attributes {dimension_semantics = [#tpu.dimension_semantics<parallel>, #tpu.dimension_semantics<parallel>], iteration_bounds = array<i64: 2, 1>, scalar_prefetch = 0 : i64, scratch_operands = 0 : i64, tpu.core_type = #tpu.core_type<tc>, window_params = [{transform_indices = @transform_0, window_bounds = array<i64: 1, 8, 32>}, {transform_indices = @transform_1, window_bounds = array<i64: 1, 8, 32>}, {pipeline_mode = #tpu.pipeline_mode<synchronous>, transform_indices = @transform_2, window_bounds = array<i64: 2, 32, 16>}, {pipeline_mode = #tpu.pipeline_mode<synchronous>, transform_indices = @transform_3, window_bounds = array<i64: 2, 32, 16>}, {pipeline_mode = #tpu.pipeline_mode<synchronous>, transform_indices = @transform_4, window_bounds = array<i64: 2, 32, 16>}, {pipeline_mode = #tpu.pipeline_mode<synchronous>, transform_indices = @transform_5, window_bounds = array<i64: 2, 16, 32>}, {pipeline_mode = #tpu.pipeline_mode<synchronous>, transform_indices = @transform_6, window_bounds = array<i64: 1, 32>}, {pipeline_mode = #tpu.pipeline_mode<synchronous>, transform_indices = @transform_7, window_bounds = array<i64: 1, 32>}, {transform_indices = @transform_8, window_bounds = array<i64: 1, 8, 32>}, {transform_indices = @transform_9, window_bounds = array<i64: 1, 2, 8, 8>}]} {
    %c0 = arith.constant 0 : index
    %c0_0 = arith.constant 0 : index
    %c0_1 = arith.constant 0 : index
    %0 = vector.load %arg2[%c0, %c0_0, %c0_1] : memref<1x8x32xf32, #tpu.memory_space<vmem>>, vector<1x8x32xf32>
    %1 = vector.shape_cast %0 : vector<1x8x32xf32> to vector<8x32xf32>
    %c0_2 = arith.constant 0 : index
    %c0_3 = arith.constant 0 : index
    %c0_4 = arith.constant 0 : index
    %2 = vector.load %arg3[%c0_2, %c0_3, %c0_4] : memref<1x8x32xbf16, #tpu.memory_space<vmem>>, vector<1x8x32xbf16>
    %3 = vector.shape_cast %2 : vector<1x8x32xbf16> to vector<8x32xbf16>
    %cst = arith.constant dense<0.000000e+00> : vector<8xf32>
    %4 = vector.multi_reduction <add>, %1, %cst [1] : vector<8x32xf32> to vector<8xf32>
    %5 = vector.shape_cast %4 : vector<8xf32> to vector<8x1xf32>
    %cst_5 = arith.constant 3.200000e+01 : f32
    %6 = vector.broadcast %cst_5 : f32 to vector<8x1xf32>
    %7 = arith.divf %5, %6 : vector<8x1xf32>
    %8 = vector.broadcast %7 : vector<8x1xf32> to vector<8x32xf32>
    %9 = arith.subf %1, %8 : vector<8x32xf32>
    %10 = arith.mulf %9, %9 : vector<8x32xf32>
    %cst_6 = arith.constant dense<0.000000e+00> : vector<8xf32>
    %11 = vector.multi_reduction <add>, %10, %cst_6 [1] : vector<8x32xf32> to vector<8xf32>
    %12 = vector.shape_cast %11 : vector<8xf32> to vector<8x1xf32>
    %cst_7 = arith.constant 3.200000e+01 : f32
    %13 = vector.broadcast %cst_7 : f32 to vector<8x1xf32>
    %14 = arith.divf %12, %13 : vector<8x1xf32>
    %cst_8 = arith.constant 9.99999997E-7 : f32
    %15 = vector.broadcast %cst_8 : f32 to vector<8x1xf32>
    %16 = arith.addf %14, %15 : vector<8x1xf32>
    %17 = math.rsqrt %16 : vector<8x1xf32>
    %18 = vector.broadcast %17 : vector<8x1xf32> to vector<8x32xf32>
    %19 = arith.mulf %9, %18 : vector<8x32xf32>
    %c0_9 = arith.constant 0 : index
    %c0_10 = arith.constant 0 : index
    %20 = vector.load %arg8[%c0_9, %c0_10] : memref<1x32xf32, #tpu.memory_space<vmem>>, vector<1x32xf32>
    %21 = vector.shape_cast %20 : vector<1x32xf32> to vector<32xf32>
    %22 = vector.shape_cast %21 : vector<32xf32> to vector<1x32xf32>
    %23 = vector.broadcast %22 : vector<1x32xf32> to vector<8x32xf32>
    %24 = arith.mulf %19, %23 : vector<8x32xf32>
    %c0_11 = arith.constant 0 : index
    %c0_12 = arith.constant 0 : index
    %25 = vector.load %arg9[%c0_11, %c0_12] : memref<1x32xf32, #tpu.memory_space<vmem>>, vector<1x32xf32>
    %26 = vector.shape_cast %25 : vector<1x32xf32> to vector<32xf32>
    %27 = vector.shape_cast %26 : vector<32xf32> to vector<1x32xf32>
    %28 = vector.broadcast %27 : vector<1x32xf32> to vector<8x32xf32>
    %29 = arith.addf %24, %28 : vector<8x32xf32>
    %30 = arith.truncf %29 : vector<8x32xf32> to vector<8x32xbf16>
    %31 = vector.shape_cast %30 : vector<8x32xbf16> to vector<1x8x32xbf16>
    %32 = vector.broadcast %31 : vector<1x8x32xbf16> to vector<2x8x32xbf16>
    %33 = vector.shape_cast %3 : vector<8x32xbf16> to vector<1x8x32xbf16>
    %34 = vector.broadcast %33 : vector<1x8x32xbf16> to vector<2x8x32xbf16>
    %c0_13 = arith.constant 0 : index
    %c0_14 = arith.constant 0 : index
    %c0_15 = arith.constant 0 : index
    %35 = vector.load %arg4[%c0_13, %c0_14, %c0_15] : memref<2x32x16xbf16, #tpu.memory_space<vmem>>, vector<2x32x16xbf16>
    "tpu.trace_start"() <{level = 10 : i32, message = "hqe,hed->hqd"}> : () -> ()
    %cst_16 = arith.constant dense<0.000000e+00> : vector<2x8x16xf32>
    %36 = tpu.matmul %32, %35, %cst_16 {dimension_numbers = #tpu.dot_dimension_numbers<[2], [1], [1], [2], [0, 0, 0, 1, 1, 2], [0], [0]>} : vector<2x8x32xbf16>, vector<2x32x16xbf16>, vector<2x8x16xf32> -> vector<2x8x16xf32>
    "tpu.trace_stop"() : () -> ()
    %cst_17 = arith.constant 0.000000e+00 : f32
    %37 = vector.broadcast %cst_17 : f32 to vector<2x8x16xf32>
    %38 = arith.maximumf %36, %37 : vector<2x8x16xf32>
    %c0_18 = arith.constant 0 : index
    %c0_19 = arith.constant 0 : index
    %c0_20 = arith.constant 0 : index
    %39 = vector.load %arg5[%c0_18, %c0_19, %c0_20] : memref<2x32x16xbf16, #tpu.memory_space<vmem>>, vector<2x32x16xbf16>
    "tpu.trace_start"() <{level = 10 : i32, message = "hke,hed->hkd"}> : () -> ()
    %cst_21 = arith.constant dense<0.000000e+00> : vector<2x8x16xf32>
    %40 = tpu.matmul %34, %39, %cst_21 {dimension_numbers = #tpu.dot_dimension_numbers<[2], [1], [1], [2], [0, 0, 0, 1, 1, 2], [0], [0]>} : vector<2x8x32xbf16>, vector<2x32x16xbf16>, vector<2x8x16xf32> -> vector<2x8x16xf32>
    "tpu.trace_stop"() : () -> ()
    %cst_22 = arith.constant 0.000000e+00 : f32
    %41 = vector.broadcast %cst_22 : f32 to vector<2x8x16xf32>
    %42 = arith.maximumf %40, %41 : vector<2x8x16xf32>
    %c0_23 = arith.constant 0 : index
    %c0_24 = arith.constant 0 : index
    %c0_25 = arith.constant 0 : index
    %43 = vector.load %arg6[%c0_23, %c0_24, %c0_25] : memref<2x32x16xbf16, #tpu.memory_space<vmem>>, vector<2x32x16xbf16>
    "tpu.trace_start"() <{level = 10 : i32, message = "hke,hed->hkd"}> : () -> ()
    %cst_26 = arith.constant dense<0.000000e+00> : vector<2x8x16xf32>
    %44 = tpu.matmul %34, %43, %cst_26 {dimension_numbers = #tpu.dot_dimension_numbers<[2], [1], [1], [2], [0, 0, 0, 1, 1, 2], [0], [0]>} : vector<2x8x32xbf16>, vector<2x32x16xbf16>, vector<2x8x16xf32> -> vector<2x8x16xf32>
    "tpu.trace_stop"() : () -> ()
    %cst_27 = arith.constant 0.000000e+00 : f32
    %45 = vector.broadcast %cst_27 : f32 to vector<2x8x16xf32>
    %46 = arith.maximumf %44, %45 : vector<2x8x16xf32>
    %47 = arith.truncf %38 : vector<2x8x16xf32> to vector<2x8x16xbf16>
    %48 = arith.truncf %42 : vector<2x8x16xf32> to vector<2x8x16xbf16>
    "tpu.trace_start"() <{level = 10 : i32, message = "hqd,hkd->hqk"}> : () -> ()
    %cst_28 = arith.constant dense<0.000000e+00> : vector<2x8x8xf32>
    %49 = tpu.matmul %47, %48, %cst_28 {dimension_numbers = #tpu.dot_dimension_numbers<[2], [2], [1], [1], [0, 0, 0, 1, 1, 1], [0], [0]>} : vector<2x8x16xbf16>, vector<2x8x16xbf16>, vector<2x8x8xf32> -> vector<2x8x8xf32>
    "tpu.trace_stop"() : () -> ()
    %c0_29 = arith.constant 0 : index
    %c0_30 = arith.constant 0 : index
    %c0_31 = arith.constant 0 : index
    %c0_32 = arith.constant 0 : index
    %50 = vector.load %arg11[%c0_29, %c0_30, %c0_31, %c0_32] : memref<1x2x8x8xf32, #tpu.memory_space<vmem>>, vector<1x2x8x8xf32>
    %51 = vector.shape_cast %50 : vector<1x2x8x8xf32> to vector<2x8x8xf32>
    %52 = vector.shape_cast %49 : vector<2x8x8xf32> to vector<1x2x8x8xf32>
    tpu.vector_store %arg11[%c0_29, %c0_30, %c0_31, %c0_32], %52 {strides = array<i32>} : memref<1x2x8x8xf32, #tpu.memory_space<vmem>>, vector<1x2x8x8xf32>,
    %cst_33 = arith.constant dense<0xFF800000> : vector<2x8xf32>
    %53 = vector.multi_reduction <maximumf>, %49, %cst_33 [2] : vector<2x8x8xf32> to vector<2x8xf32>
    %54 = vector.shape_cast %53 : vector<2x8xf32> to vector<2x8x1xf32>
    %55 = vector.broadcast %54 : vector<2x8x1xf32> to vector<2x8x8xf32>
    %56 = arith.subf %49, %55 : vector<2x8x8xf32>
    %57 = math.exp %56 : vector<2x8x8xf32>
    %cst_34 = arith.constant dense<0.000000e+00> : vector<2x8xf32>
    %58 = vector.multi_reduction <add>, %57, %cst_34 [2] : vector<2x8x8xf32> to vector<2x8xf32>
    %59 = vector.shape_cast %58 : vector<2x8xf32> to vector<2x8x1xf32>
    %60 = tpu.reciprocal %59 {approx = true} : vector<2x8x1xf32> -> vector<2x8x1xf32>
    %61 = vector.broadcast %60 : vector<2x8x1xf32> to vector<2x8x8xf32>
    %62 = arith.mulf %57, %61 : vector<2x8x8xf32>
    %63 = arith.truncf %62 : vector<2x8x8xf32> to vector<2x8x8xbf16>
    %64 = arith.truncf %46 : vector<2x8x16xf32> to vector<2x8x16xbf16>
    "tpu.trace_start"() <{level = 10 : i32, message = "hqk,hkd->hqd"}> : () -> ()
    %cst_35 = arith.constant dense<0.000000e+00> : vector<2x8x16xf32>
    %65 = tpu.matmul %63, %64, %cst_35 {dimension_numbers = #tpu.dot_dimension_numbers<[2], [1], [1], [2], [0, 0, 0, 1, 1, 2], [0], [0]>} : vector<2x8x8xbf16>, vector<2x8x16xbf16>, vector<2x8x16xf32> -> vector<2x8x16xf32>
    "tpu.trace_stop"() : () -> ()
    %66 = arith.truncf %65 : vector<2x8x16xf32> to vector<2x8x16xbf16>
    %c0_36 = arith.constant 0 : index
    %c0_37 = arith.constant 0 : index
    %c0_38 = arith.constant 0 : index
    %67 = vector.load %arg7[%c0_36, %c0_37, %c0_38] : memref<2x16x32xbf16, #tpu.memory_space<vmem>>, vector<2x16x32xbf16>
    "tpu.trace_start"() <{level = 10 : i32, message = "hqd,hde->hqe"}> : () -> ()
    %cst_39 = arith.constant dense<0.000000e+00> : vector<2x8x32xf32>
    %68 = tpu.matmul %66, %67, %cst_39 {dimension_numbers = #tpu.dot_dimension_numbers<[2], [1], [1], [2], [0, 0, 0, 1, 1, 2], [0], [0]>} : vector<2x8x16xbf16>, vector<2x16x32xbf16>, vector<2x8x32xf32> -> vector<2x8x32xf32>
    "tpu.trace_stop"() : () -> ()
    %cst_40 = arith.constant dense<0.000000e+00> : vector<8x32xf32>
    %69 = vector.multi_reduction <add>, %68, %cst_40 [0] : vector<2x8x32xf32> to vector<8x32xf32>
    %70 = arith.addf %69, %1 : vector<8x32xf32>
    %c0_41 = arith.constant 0 : index
    %c0_42 = arith.constant 0 : index
    %c0_43 = arith.constant 0 : index
    %71 = vector.load %arg10[%c0_41, %c0_42, %c0_43] : memref<1x8x32xf32, #tpu.memory_space<vmem>>, vector<1x8x32xf32>
    %72 = vector.shape_cast %71 : vector<1x8x32xf32> to vector<8x32xf32>
    %73 = vector.shape_cast %70 : vector<8x32xf32> to vector<1x8x32xf32>
    tpu.vector_store %arg10[%c0_41, %c0_42, %c0_43], %73 {strides = array<i32>} : memref<1x8x32xf32, #tpu.memory_space<vmem>>, vector<1x8x32xf32>,
    return
  }
  func.func @transform_0(%arg0: i32, %arg1: i32) -> (i32, i32, i32) {
    %c0_i32 = arith.constant 0 : i32
    %c0_i32_0 = arith.constant 0 : i32
    return %arg0, %arg1, %c0_i32 : i32, i32, i32
  }
  func.func @transform_1(%arg0: i32, %arg1: i32) -> (i32, i32, i32) {
    %c0_i32 = arith.constant 0 : i32
    %c0_i32_0 = arith.constant 0 : i32
    %c0_i32_1 = arith.constant 0 : i32
    return %arg0, %c0_i32, %c0_i32_0 : i32, i32, i32
  }
  func.func @transform_2(%arg0: i32, %arg1: i32) -> (i32, i32, i32) {
    %c0_i32 = arith.constant 0 : i32
    %c0_i32_0 = arith.constant 0 : i32
    %c0_i32_1 = arith.constant 0 : i32
    %c0_i32_2 = arith.constant 0 : i32
    return %c0_i32, %c0_i32_0, %c0_i32_1 : i32, i32, i32
  }
  func.func @transform_3(%arg0: i32, %arg1: i32) -> (i32, i32, i32) {
    %c0_i32 = arith.constant 0 : i32
    %c0_i32_0 = arith.constant 0 : i32
    %c0_i32_1 = arith.constant 0 : i32
    %c0_i32_2 = arith.constant 0 : i32
    return %c0_i32, %c0_i32_0, %c0_i32_1 : i32, i32, i32
  }
  func.func @transform_4(%arg0: i32, %arg1: i32) -> (i32, i32, i32) {
    %c0_i32 = arith.constant 0 : i32
    %c0_i32_0 = arith.constant 0 : i32
    %c0_i32_1 = arith.constant 0 : i32
    %c0_i32_2 = arith.constant 0 : i32
    return %c0_i32, %c0_i32_0, %c0_i32_1 : i32, i32, i32
  }
  func.func @transform_5(%arg0: i32, %arg1: i32) -> (i32, i32, i32) {
    %c0_i32 = arith.constant 0 : i32
    %c0_i32_0 = arith.constant 0 : i32
    %c0_i32_1 = arith.constant 0 : i32
    %c0_i32_2 = arith.constant 0 : i32
    return %c0_i32, %c0_i32_0, %c0_i32_1 : i32, i32, i32
  }
  func.func @transform_6(%arg0: i32, %arg1: i32) -> (i32, i32) {
    %c0_i32 = arith.constant 0 : i32
    %c0_i32_0 = arith.constant 0 : i32
    %c0_i32_1 = arith.constant 0 : i32
    return %c0_i32, %c0_i32_0 : i32, i32
  }
  func.func @transform_7(%arg0: i32, %arg1: i32) -> (i32, i32) {
    %c0_i32 = arith.constant 0 : i32
    %c0_i32_0 = arith.constant 0 : i32
    %c0_i32_1 = arith.constant 0 : i32
    return %c0_i32, %c0_i32_0 : i32, i32
  }
  func.func @transform_8(%arg0: i32, %arg1: i32) -> (i32, i32, i32) {
    %c0_i32 = arith.constant 0 : i32
    %c0_i32_0 = arith.constant 0 : i32
    return %arg0, %arg1, %c0_i32 : i32, i32, i32
  }
  func.func @transform_9(%arg0: i32, %arg1: i32) -> (i32, i32, i32, i32) {
    %c0_i32 = arith.constant 0 : i32
    %c0_i32_0 = arith.constant 0 : i32
    %c0_i32_1 = arith.constant 0 : i32
    return %arg0, %c0_i32, %arg1, %c0_i32_0 : i32, i32, i32, i32
  }
}

</mosaic_0001>

<bundles_post_ra>
// kernel: tpu_custom_call.1
= control target key start
LH: loop header
LB: loop body
LE: loop exit
PB: predicated region body
PF: predicated region fallthrough
CT: control target
= control target key end

     0   :  { %15 = vsyncpa [#allocation3], 0  ;;  %s1944_s0 = inlined_call_operand.vmem [shape: f32[2,8,32], index: 0, kind: input, shape index: {}]   ;;  %s1945_s1 = inlined_call_operand.vmem [shape: bf16[2,8,32], index: 1, kind: input, shape index: {}]   ;;  %s1946_s2 = inlined_call_operand.vmem [shape: bf16[2,32,16], index: 2, kind: input, shape index: {}]   ;;  %s1947_s3 = inlined_call_operand.vmem [shape: bf16[2,32,16], index: 3, kind: input, shape index: {}]   ;;  %s1948_s4 = inlined_call_operand.vmem [shape: bf16[2,32,16], index: 4, kind: input, shape index: {}]   ;;  %s1949_s5 = inlined_call_operand.vmem [shape: bf16[2,16,32], index: 5, kind: input, shape index: {}]   ;;  %s1950_s6 = inlined_call_operand.vmem [shape: f32[1,32], index: 6, kind: input, shape index: {}]   ;;  %s1951_s7 = inlined_call_operand.vmem [shape: f32[1,32], index: 7, kind: input, shape index: {}]   ;;  %s1952_s8 = inlined_call_operand.hbm [shape: f32[2,8,32], index: 8, kind: output, shape index: {0}]   ;;  %s1953_s9 = inlined_call_operand.hbm [shape: f32[2,2,8,8], index: 9, kind: output, shape index: {1}]  }
   0x1   :  { %17 = vsyncpa [#allocation3 + $0x1], 0 }
   0x2   :  { %18 = vsyncpa [#allocation5], 0 }
   0x3   :  { %20 = vsyncpa [#allocation5 + $0x1], 0  ;;  %s1663_s30 = smov 0   ;;  %s1665_s10 = smov 0  }
   0x4   :  { %s1667_s11 = smov 0   ;;  %s1669_s12 = smov 0  }
   0x5   :  { %s1671_s13 = smov 0   ;;  %s1673_s14 = smov 0  }
   0x6 LB: > { %s1248_s15 = sadd.s32 4294967295, %s1605_s14   ;;  %s1249_s16 = sadd.s32 4294967294, %s1605_s14   ;;  %s1605_s14 = sphi %s1673_s14, %s26_s14   ;;  %s1601_s13 = sphi %s1671_s13, %s1961_s13   ;;  %s1597_s12 = sphi %s1669_s12, %s1960_s12   ;;  %s1593_s11 = sphi %s1667_s11, %s1959_s11   ;;  %s1589_s10 = sphi %s1665_s10, %s1958_s10   ;;  %s1585_s30 = sphi %s1663_s30, %s1957_s30  }
   0x7   : > { %s38_s17 = sadd.s32 1, %s1601_s13  ;;  %s227_s18 = sadd.s32 1, %s1593_s11 }
   0x8   : > { %p40_p0 = scmp.ge.s32.totalorder %s38_s17, 2  ;;  %p237_p1 = scmp.ne.s32.totalorder %s1593_s11, %s1589_s10 }
   0x9   : > { %p238_p2 = scmp.eq.s32.totalorder %s1248_s15, 1  ;;  %p243_p3 = scmp.ne.s32.totalorder %s1589_s10, %s1585_s30 }
   0xa   : > { %s1963_s17 = smov (%p40_p0, %s38_s17), 0  ;;  %p244_p5 = scmp.eq.s32.totalorder %s1249_s16, 1 }
   0xb   : > { %p1703_p4 = por %p238_p2, %p237_p1  ;;  %s222_s20 = ssub.s32 %s1601_s13, %s1963_s17 }
   0xc   : > { %p1252_p6 = scmp.ge.s32.totalorder %s1605_s14, 1  ;;  %p225_p7 = scmp.eq.s32.totalorder %s222_s20, 0 }
   0xd   : > { %p1710_p8 = por %p244_p5, %p243_p3  ;;  %p325_p9 = scmp.lt.s32.totalorder %s1605_s14, 3 }
   0xe   : > { %s1716_s22 = scalar_select %p225_p7, %s1593_s11, %s227_s18  }
   0xf   : > { %p326_p10 = pnand %p1252_p6, %p325_p9 }
  0x10   : > { %p372_p11 = scmp.lt.s32.totalorder (!%p326_p10), %s1597_s12, 1  ;;  %vm386_vm0 = vcmask (!%p326_p10), 261120   ;;  %v1471_v7 = vld [vmem:[%s1946_s2] sm:$0xff] (!%p326_p10)   ;;  %v1472_v8 = vld [vmem:[%s1946_s2 + $0x10] sm:$0xff] (!%p326_p10)   ;;  %v1607_v9 = vmov (!%p326_p10), 0.0   ;;  %v1473_v10 = vld [vmem:[%s1946_s2 + $0x8] sm:$0xff] (!%p326_p10)  }
  0x11   : > { %329 = sbr.rel (%p326_p10) target bundleno = 1553 (0x611), region = 52  ;;  %1323 = vmatprep.subr.bf16.mxu0 (!%p326_p10), %v1607_v9  ;;  %1331 = vmatprep.subr.bf16.mxu1 (!%p326_p10), %v1607_v9  ;;  %v1474_v11 = vld [vmem:[%s1946_s2 + $0x18] sm:$0xff] (!%p326_p10)   ;;  %vm1608_vm1 = vmmov (!%p326_p10), 0   ;;  %v1257_v16 = vld [vmem:[%s1950_s6] ss:$0 sm:$0xff] (!%p326_p10)  ;;  %v1476_v22 = vld [vmem:[%s1947_s3 + $0x10] sm:$0xff] (!%p326_p10)  }
  0x12   : > { %1324 = vmatpush3.bf16.msra.mxu0 (!%p326_p10), %v1471_v7  ;;  %1332 = vmatpush3.bf16.msra.mxu1 (!%p326_p10), %v1472_v8  ;;  %v1258_v18 = vld [vmem:[%s1951_s7] ss:$0 sm:$0xff] (!%p326_p10)  ;;  %v1477_v24 = vld [vmem:[%s1947_s3 + $0x8] sm:$0xff] (!%p326_p10)   ;;  %v1478_v25 = vld [vmem:[%s1947_s3 + $0x18] sm:$0xff] (!%p326_p10)   ;;  %vm770_vm2 = vcmask (!%p326_p10), 130048   ;;  %vm895_vm3 = vcmask (!%p326_p10), 1043456  }
  0x13   : > { %1325 = vmatprep.subr.bf16.mxu0 (!%p326_p10), %v1607_v9  ;;  %1333 = vmatprep.subr.bf16.mxu1 (!%p326_p10), %v1607_v9  ;;  %v1475_v21 = vld [vmem:[%s1947_s3] sm:$0xff] (!%p326_p10)   ;;  %v1480_v28 = vld [vmem:[%s1948_s4 + $0x10] sm:$0xff] (!%p326_p10)   ;;  %v1481_v29 = vld [vmem:[%s1948_s4 + $0x8] sm:$0xff] (!%p326_p10)   ;;  %s1827_s29 = sand.u32 (!%p326_p10), 1, %s1589_s10   ;;  %vm863_vm4 = vcmask (!%p326_p10), 64512   ;;  %s1292_s26 = sshll.u32 (!%p326_p10), %s1597_s12, 8 }
  0x14   : > { %1327 = vmatprep.mubr.msk.bf16.mxu0 (!%p326_p10), %vm1608_vm1, %v1607_v9  ;;  %1335 = vmatprep.mubr.msk.bf16.mxu1 (!%p326_p10), %vm1608_vm1, %v1607_v9  ;;  %v1479_v27 = vld [vmem:[%s1948_s4] sm:$0xff] (!%p326_p10)   ;;  %v1482_v30 = vld [vmem:[%s1948_s4 + $0x18] sm:$0xff] (!%p326_p10)   ;;  %s1609_s20 = smov (!%p326_p10), [#allocation4]  }
  0x16   : > { %1326 = vmatpush3.bf16.msra.mxu0 (!%p326_p10), %v1473_v10  ;;  %1334 = vmatpush3.bf16.msra.mxu1 (!%p326_p10), %v1474_v11 }
  0x17   : > { %1339 = vmatprep.subr.bf16.mxu0 (!%p326_p10), %v1607_v9  ;;  %1347 = vmatprep.subr.bf16.mxu1 (!%p326_p10), %v1607_v9 }
  0x18   : > { %s1720_s23 = scalar_select %p372_p11, %s1597_s12, 1 }
  0x1a   : > { %s1255_s24 = sshll.u32 %s1720_s23, 3 }
  0x1b   : > { %s378_s27 = scalar_lea.vmem %s1944_s0, %s1255_s24  ;;  %s1256_s24 = sshll.u32 %s1720_s23, 2 }
  0x1c   : > { %v1726_v0 = vld [vmem:[%s378_s27] sm:$0xff]  ;;  %s382_s15 = scalar_lea.vmem %s1945_s1, %s1256_s24  ;;  %s1254_s23 = sshll.u32 %s1827_s29, 4 }
  0x1d   : > { %v387_v1 = vsel %vm386_vm0, %v1726_v0, 0.0  ;;  %v385_v26 = vld [vmem:[%s382_s15] sm:$0xf]  ;;  %s1830_s15 = scalar_lea.vmem [#allocation4], %s1254_s23  ;;  %s1861_s23 = scalar_lea.hbm %s1953_s9, %s1292_s26 }
  0x1e   : > { %388 = vadd.xlane.f32.xlu0 %v387_v1  ;;  %s1128_s25 = sshll.u32 %s1830_s15, 4  ;;  %s1499_s24 = sshll.u32 %s1609_s20, 4  ;;  %s1855_s25 = int_to_ptr.vmem [resolvable:$true] %s1128_s25  ;;  %s1500_s24 = int_to_ptr.vmem [resolvable:$false] %s1499_s24 }
  0x1f   : > { %s1495_s18 = scalar_lea.vmem %s1855_s25, 256  ;;  %p1502_p1 = scmp.lt.s32.totalorder %s1855_s25, %s1500_s24 }
  0x20   : > { %p1496_p12 = scmp.ne.s32.totalorder %s1855_s25, %s1495_s18 }
  0x22   : > { %p1497_p13 = pnand %p1496_p12, %p1703_p4 }
  0x24   : > { %p1498_p0 = pneg %p1497_p13 }
  0xab   : > { %v389_v2 = vpop.xlane.xlu0 %388 }
  0xac   : > { %v391_v3 = vmul.f32 0.03125, %v389_v2 }
  0xae   : > { %v392_v4 = vsub.f32 %v1726_v0, %v391_v3 }
  0xb0   : > { %v393_v5 = vmul.f32 %v392_v4, %v392_v4 }
  0xb2   : > { %v394_v6 = vsel %vm386_vm0, %v393_v5, 0.0 }
  0xb3   : > { %395 = vadd.xlane.f32.xlu0 %v394_v6 }
 0x140   : > { %v396_v12 = vpop.xlane.xlu0 %395 }
 0x141   : > { %v397_v13 = vmul.f32 0.03125, %v396_v12 }
 0x143   : > { %v398_v14 = vadd.f32 1e-06, %v397_v13 }
 0x145   : > { %1485 = vrsqrt.f32 %v398_v14 }
 0x14f   : > { %v1486_v15 = vpop.eup %1485 }
 0x150   : > { %v400_v17 = vmul.f32 %v1486_v15, %v392_v4 }
 0x152   : > { %v408_v19 = vmul.f32 %v1257_v16, %v400_v17 }
 0x154   : > { %v416_v20 = vadd.f32 %v1258_v18, %v408_v19 }
 0x156   : > { %v417_v23 = vpack.c.bf16 %v416_v20, %v416_v20 }
 0x158   : > { %1328 = vmatmul.mubr.msk.bf16.vlgmr.msra.gmra.mrb[0].mxu0 %vm386_vm0, %v417_v23  ;;  %1336 = vmatmul.mubr.msk.bf16.vlgmr.msra.gmra.mrb[0].mxu1 %vm386_vm0, %v417_v23 }
 0x159   : > { %1340 = vmatpush3.bf16.msra.mxu0 %v1475_v21  ;;  %1348 = vmatpush3.bf16.msra.mxu1 %v1476_v22 }
 0x15a   : > { %1341 = vmatprep.subr.bf16.mxu0 %v1607_v9  ;;  %1349 = vmatprep.subr.bf16.mxu1 %v1607_v9 }
 0x15b   : > { %1343 = vmatprep.mubr.msk.bf16.mxu0 %vm1608_vm1, %v1607_v9  ;;  %1351 = vmatprep.mubr.msk.bf16.mxu1 %vm1608_vm1, %v1607_v9 }
 0x15d   : > { %1342 = vmatpush3.bf16.msra.mxu0 %v1477_v24  ;;  %1350 = vmatpush3.bf16.msra.mxu1 %v1478_v25 }
 0x15e   : > { %1355 = vmatprep.subr.bf16.mxu0 %v1607_v9  ;;  %1363 = vmatprep.subr.bf16.mxu1 %v1607_v9 }
 0x160   : > { %1344 = vmatmul.mubr.msk.bf16.vlgmr.msra.gmra.mrb[4].mxu0 %vm386_vm0, %v385_v26  ;;  %1352 = vmatmul.mubr.msk.bf16.vlgmr.msra.gmra.mrb[4].mxu1 %vm386_vm0, %v385_v26 }
 0x161   : > { %1359 = vmatprep.mubr.msk.bf16.mxu0 %vm1608_vm1, %v1607_v9  ;;  %1367 = vmatprep.mubr.msk.bf16.mxu1 %vm1608_vm1, %v1607_v9 }
 0x162   : > { %1356 = vmatpush3.bf16.msra.mxu0 %v1479_v27  ;;  %1364 = vmatpush3.bf16.msra.mxu1 %v1480_v28 }
 0x163   : > { %1357 = vmatprep.subr.bf16.mxu0 %v1607_v9  ;;  %1365 = vmatprep.subr.bf16.mxu1 %v1607_v9 }
 0x166   : > { %1358 = vmatpush3.bf16.msra.mxu0 %v1481_v29  ;;  %1366 = vmatpush3.bf16.msra.mxu1 %v1482_v30 }
 0x167   : > { %1371 = vmatprep.subr.bf16.mxu0 %v1607_v9  ;;  %1377 = vmatprep.subr.bf16.mxu1 %v1607_v9 }
 0x169   : > { %1360 = vmatmul.mubr.msk.bf16.vlgmr.msra.gmra.mrb[8].mxu0 %vm386_vm0, %v385_v26  ;;  %1368 = vmatmul.mubr.msk.bf16.vlgmr.msra.gmra.mrb[8].mxu1 %vm386_vm0, %v385_v26 }
 0x16a   : > { %1373 = vmatprep.mubr.msk.bf16.mxu0 %vm1608_vm1, %v1607_v9  ;;  %1379 = vmatprep.mubr.msk.bf16.mxu1 %vm1608_vm1, %v1607_v9 }
 0x22b   : > { %v475_v31 = vpop.f32.mrb[0].mxu0  ;;  %v527_v32 = vpop.f32.mrb[0].mxu1 }
 0x22c   : > { %v1329_v33 = vpop.f32.mrb[1].mxu0  ;;  %v1337_v34 = vpop.f32.mrb[1].mxu1  ;;  %v533_v53 = vmax.f32 %v475_v31, 0.0  ;;  %v534_v54 = vmax.f32 %v527_v32, 0.0 }
 0x22d   : > { %v478_v35 = vpop.f32.mrb[2].mxu0  ;;  %v530_v36 = vpop.f32.mrb[2].mxu1 }
 0x22e   : > { %v1330_v37 = vpop.f32.mrb[3].mxu0  ;;  %v1338_v38 = vpop.f32.mrb[3].mxu1  ;;  %v766_v55 = vpack.c.bf16 %v533_v53, %v533_v53  ;;  %v767_v56 = vpack.c.bf16 %v534_v54, %v534_v54 }
 0x22f   : > { %v1483_v37 = vld [vmem:[%s1949_s5] sm:$0xff]   ;;  %v1484_v38 = vld [vmem:[%s1949_s5 + $0x8] sm:$0xff]  }
 0x233   : > { %v592_v39 = vpop.f32.mrb[4].mxu0  ;;  %v644_v40 = vpop.f32.mrb[4].mxu1 }
 0x234   : > { %v650_v41 = vmax.f32 %v592_v39, 0.0  ;;  %v651_v42 = vmax.f32 %v644_v40, 0.0  ;;  %v1345_v43 = vpop.f32.mrb[5].mxu0  ;;  %v1353_v44 = vpop.f32.mrb[5].mxu1 }
 0x235   : > { %v595_v45 = vpop.f32.mrb[6].mxu0  ;;  %v647_v46 = vpop.f32.mrb[6].mxu1 }
 0x236   : > { %v768_v47 = vpack.c.bf16 %v650_v41, %v650_v41  ;;  %v769_v48 = vpack.c.bf16 %v651_v42, %v651_v42  ;;  %v1346_v49 = vpop.f32.mrb[7].mxu0  ;;  %v1354_v50 = vpop.f32.mrb[7].mxu1 }
 0x238   : > { %v775_v51 = vsel %vm770_vm2, %v768_v47, 0  ;;  %v821_v52 = vsel %vm770_vm2, %v769_v48, 0 }
 0x239   : > { %1372 = vmatpush3.bf16.xpose.msra.mxu0 %v775_v51  ;;  %1378 = vmatpush3.bf16.xpose.msra.mxu1 %v821_v52 }
 0x23a   : > { %1383 = vmatprep.subr.bf16.mxu0 %v1607_v9  ;;  %1389 = vmatprep.subr.bf16.mxu1 %v1607_v9 }
 0x23c   : > { %v706_v57 = vpop.f32.mrb[8].mxu0  ;;  %v758_v58 = vpop.f32.mrb[8].mxu1 }
 0x23d   : > { %v764_v59 = vmax.f32 %v706_v57, 0.0  ;;  %v1361_v60 = vpop.f32.mrb[9].mxu0  ;;  %v765_v61 = vmax.f32 %v758_v58, 0.0  ;;  %v1369_v62 = vpop.f32.mrb[9].mxu1 }
 0x23e   : > { %v709_v63 = vpop.f32.mrb[10].mxu0  ;;  %v761_v1 = vpop.f32.mrb[10].mxu1 }
 0x23f   : > { %v890_v2 = vpack.c.bf16 %v764_v59, %v764_v59  ;;  %v1362_v3 = vpop.f32.mrb[11].mxu0  ;;  %v891_v4 = vpack.c.bf16 %v765_v61, %v765_v61  ;;  %v1370_v5 = vpop.f32.mrb[11].mxu1 }
 0x240   : > { %1374 = vmatmul.mubr.msk.bf16.vlgmr.msra.gmra.mrb[12].mxu0 %vm770_vm2, %v766_v55  ;;  %1380 = vmatmul.mubr.msk.bf16.vlgmr.msra.gmra.mrb[12].mxu1 %vm770_vm2, %v767_v56 }
 0x241   : > { %1385 = vmatprep.mubr.msk.bf16.mxu0 %vm1608_vm1, %v1607_v9  ;;  %1391 = vmatprep.mubr.msk.bf16.mxu1 %vm1608_vm1, %v1607_v9  ;;  %v897_v6 = vsel %vm895_vm3, %v890_v2, 0  ;;  %v943_v7 = vsel %vm895_vm3, %v891_v4, 0 }
 0x242   : > { %1384 = vmatpush3.bf16.msra.mxu0 %v897_v6  ;;  %1390 = vmatpush3.bf16.msra.mxu1 %v943_v7 }
 0x243   : > { %1395 = vmatprep.subr.bf16.mxu0 %v1607_v9  ;;  %1401 = vmatprep.subr.bf16.mxu1 %v1607_v9 }
 0x313   : > { %v811_v8 = vpop.f32.mrb[12].mxu0  ;;  %v857_v10 = vpop.f32.mrb[12].mxu1 }
 0x314   : > { %864 = vst.msk [vmem:[%s1830_s15] sm:$0xff] %vm863_vm4, %v811_v8  ;;  %865 = vst.msk [vmem:[%s1830_s15 + $0x8] sm:$0xff] %vm863_vm4, %v857_v10  ;;  %v1375_v11 = vpop.f32.mrb[13].mxu0  ;;  %v1381_v12 = vpop.f32.mrb[13].mxu1  ;;  %v866_v13 = vsel %vm863_vm4, %v811_v8, -inf  ;;  %v869_v18 = vsel %vm863_vm4, %v857_v10, -inf }
 0x315   : > { %v860_v14 = vpop.f32.mrb[14].mxu1  ;;  %867 = vmax.xlane.f32.xlu1 %v866_v13  ;;  %v814_v15 = vpop.f32.mrb[14].mxu0  ;;  %s1501_s15 = scalar_lea.vmem %s1500_s24, 512 }
 0x316   : > { %v1376_v16 = vpop.f32.mrb[15].mxu0  ;;  %v1382_v17 = vpop.f32.mrb[15].mxu1  ;;  %p1503_p2 = scmp.lt.s32.totalorder %s1501_s15, %s1495_s18 }
 0x318   : > { %p1504_p3 = por %p1503_p2, %p1502_p1 }
 0x319   : > { %870 = vmax.xlane.f32.xlu1 %v869_v18 }
 0x31a   : > { %p1505_p5 = pnand %p1504_p3, %p1498_p0 }
 0x3a2   : > { %v868_v19 = vpop.xlane.xlu1 %867 }
 0x3a3   : > { %v872_v20 = vsub.f32 %v811_v8, %v868_v19 }
 0x3a5   : > { %v874_v21 = vmul.f32 1.442695, %v872_v20 }
 0x3a6   : > { %v871_v22 = vpop.xlane.xlu1 %870 }
 0x3a7   : > { %1487 = vpow2.f32 %v874_v21  ;;  %v873_v23 = vsub.f32 %v857_v10, %v871_v22 }
 0x3a9   : > { %v876_v24 = vmul.f32 1.442695, %v873_v23 }
 0x3ab   : > { %1489 = vpow2.f32 %v876_v24 }
 0x3b1   : > { %v1488_v25 = vpop.eup %1487 }
 0x3b2   : > { %v878_v26 = vsel %vm863_vm4, %v1488_v25, 0.0 }
 0x3b3   : > { %879 = vadd.xlane.f32.xlu0 %v878_v26 }
 0x3b5   : > { %v1490_v27 = vpop.eup %1489 }
 0x3b6   : > { %v881_v28 = vsel %vm863_vm4, %v1490_v27, 0.0 }
 0x3b7   : > { %882 = vadd.xlane.f32.xlu1 %v881_v28 }
 0x440   : > { %v880_v29 = vpop.xlane.xlu0 %879 }
 0x441   : > { %1491 = vrcp.f32 %v880_v29 }
 0x444   : > { %v883_v30 = vpop.xlane.xlu1 %882 }
 0x445   : > { %1493 = vrcp.f32 %v883_v30 }
 0x44b   : > { %v1492_v31 = vpop.eup %1491 }
 0x44c   : > { %v886_v32 = vmul.f32 %v1492_v31, %v1488_v25 }
 0x44e   : > { %v888_v33 = vpack.c.bf16 %v886_v32, %v886_v32 }
 0x44f   : > { %v1494_v34 = vpop.eup %1493 }
 0x450   : > { %v887_v35 = vmul.f32 %v1494_v34, %v1490_v27  ;;  %1386 = vmatmul.mubr.msk.bf16.vlgmr.msra.gmra.mrb[16].mxu0 %vm863_vm4, %v888_v33 }
 0x451   : > { %1397 = vmatprep.mubr.msk.bf16.mxu0 %vm1608_vm1, %v1607_v9  ;;  %1396 = vmatpush3.bf16.msra.mxu0 %v1483_v37 }
 0x452   : > { %v889_v36 = vpack.c.bf16 %v887_v35, %v887_v35 }
 0x454   : > { %1392 = vmatmul.mubr.msk.bf16.vlgmr.msra.gmra.mrb[16].mxu1 %vm863_vm4, %v889_v36 }
 0x455   : > { %1403 = vmatprep.mubr.msk.bf16.mxu1 %vm1608_vm1, %v1607_v9  ;;  %1402 = vmatpush3.bf16.msra.mxu1 %v1484_v38 }
 0x523   : > { %v933_v39 = vpop.f32.mrb[16].mxu0 }
 0x524   : > { %v985_v40 = vpack.c.bf16 %v933_v39, %v933_v39  ;;  %v1387_v41 = vpop.f32.mrb[17].mxu0 }
 0x525   : > { %v936_v42 = vpop.f32.mrb[18].mxu0 }
 0x526   : > { %v1388_v43 = vpop.f32.mrb[19].mxu0  ;;  %1398 = vmatmul.mubr.msk.bf16.vlgmr.msra.gmra.mrb[20].mxu0 %vm770_vm2, %v985_v40 }
 0x527   : > { %v979_v9 = vpop.f32.mrb[16].mxu1 }
 0x528   : > { %v986_v44 = vpack.c.bf16 %v979_v9, %v979_v9  ;;  %v1393_v45 = vpop.f32.mrb[17].mxu1 }
 0x529   : > { %v982_v46 = vpop.f32.mrb[18].mxu1 }
 0x52a   : > { %v1394_v47 = vpop.f32.mrb[19].mxu1  ;;  %1404 = vmatmul.mubr.msk.bf16.vlgmr.msra.gmra.mrb[20].mxu1 %vm770_vm2, %v986_v44 }
 0x52b   : > { %1508 = shalt.err (!%p1505_p5)
}
 0x52c   : > { %s1509_s26 = scalar_lea.hbm %s1861_s23, 256  ;;  %s1513_s20 = scalar_lea.hbm %s1953_s9, 512 }
 0x52d   : > { %p1510_p6 = scmp.ne.s32.totalorder %s1861_s23, %s1509_s26  ;;  %p1514_p10 = scmp.lt.u32.totalorder %s1861_s23, %s1953_s9 }
 0x52e   : > { %p1515_p11 = scmp.lt.u32.totalorder %s1513_s20, %s1509_s26  ;;  %p1517_p13 = scmp.lt.u32.totalorder %s1509_s26, %s1861_s23 }
 0x52f   : > { %p1511_p7 = pnand %p1510_p6, %p1703_p4 }
 0x530   : > { %p1516_p12 = por %p1515_p11, %p1514_p10 }
 0x531   : > { %p1512_p9 = pneg %p1511_p7 }
 0x532   : > { %p1518_p0 = por %p1517_p13, %p1516_p12 }
 0x534   : > { %p1519_p1 = pnand %p1518_p0, %p1512_p9 }
 0x536   : > { %1522 = shalt.err (!%p1519_p1)
}
 0x537   : > { %s1610_s18 = smov 128   ;;  %s1611_s15 = smov 8  }
 0x538   : > { %s1956_s27 = scalar_lea.sflag [#allocation5], %s1827_s29  ;;  %s1253_s28 = sshll.u32 %s1827_s29, 3 }
 0x539   : > { %1408 = dma.vmem_to_hbm [thread:$0]  (%p1703_p4), %s1855_s25, 256, %s1861_s23, %s1956_s27, %s1610_s18, %s1610_s18, %s1611_s15  }
 0x53a   : > { %s1287_s16 = sshll.u32 %s1597_s12, 7  ;;  %s364_s26 = scalar_lea.vmem [#allocation2], %s1253_s28 }
 0x53b   : > { %s1114_s20 = sshll.u32 %s364_s26, 4  ;;  %s1895_s24 = scalar_lea.hbm %s1952_s8, %s1287_s16  ;;  %s1897_s20 = int_to_ptr.vmem [resolvable:$true] %s1114_s20 }
 0x53c   : > { %s1095_s12 = scalar_lea.sflag [#allocation3], %s1827_s29  ;;  %s1523_s18 = scalar_lea.vmem %s1897_s20, 128 }
 0x53d   : > { %p1524_p2 = scmp.ne.s32.totalorder %s1897_s20, %s1523_s18  ;;  %s1612_s15 = smov [#allocation2]  }
 0x53e   : > { %s1527_s27 = sshll.u32 %s1612_s15, 4  ;;  %s1528_s27 = int_to_ptr.vmem [resolvable:$false] %s1527_s27 }
 0x53f   : > { %p1525_p3 = pnand %p1524_p2, %p1703_p4  ;;  %s1529_s28 = scalar_lea.vmem %s1528_s27, 256 }
 0x540   : > { %p1530_p6 = scmp.lt.s32.totalorder %s1897_s20, %s1528_s27  ;;  %p1531_p7 = scmp.lt.s32.totalorder %s1529_s28, %s1523_s18 }
 0x541   : > { %p1526_p5 = pneg %p1525_p3 }
 0x542   : > { %p1532_p9 = por %p1531_p7, %p1530_p6 }
 0x544   : > { %p1533_p10 = pnand %p1532_p9, %p1526_p5 }
 0x5f9   : > { %v1034_v48 = vpop.f32.mrb[20].mxu0 }
 0x5fa   : > { %v1399_v49 = vpop.f32.mrb[21].mxu0  ;;  %v1089_v53 = vsel %vm386_vm0, %v1034_v48, 0.0 }
 0x5fb   : > { %v1037_v50 = vpop.f32.mrb[22].mxu0 }
 0x5fc   : > { %v1400_v51 = vpop.f32.mrb[23].mxu0 }
 0x5fd   : > { %v1083_v52 = vpop.f32.mrb[20].mxu1 }
 0x5fe   : > { %v1090_v54 = vsel %vm386_vm0, %v1083_v52, 0.0  ;;  %v1405_v55 = vpop.f32.mrb[21].mxu1 }
 0x5ff   : > { %v1091_v56 = vadd.f32 %v1090_v54, %v1089_v53  ;;  %v1086_v57 = vpop.f32.mrb[22].mxu1 }
 0x600   : > { %v1406_v58 = vpop.f32.mrb[23].mxu1 }
 0x601   : > { %v1092_v59 = vadd.f32 %v1091_v56, %v1726_v0 }
 0x603   : > { %1093 = vst.msk [vmem:[%s364_s26] sm:$0xff] %vm386_vm0, %v1092_v59 }
 0x604   : > { %1536 = shalt.err (!%p1533_p10)
}
 0x605   : > { %s1537_s29 = scalar_lea.hbm %s1895_s24, 128  ;;  %s1541_s25 = scalar_lea.hbm %s1952_s8, 256 }
 0x606   : > { %p1538_p11 = scmp.ne.s32.totalorder %s1895_s24, %s1537_s29  ;;  %p1542_p0 = scmp.lt.u32.totalorder %s1895_s24, %s1952_s8 }
 0x607   : > { %p1543_p1 = scmp.lt.u32.totalorder %s1541_s25, %s1537_s29  ;;  %p1545_p3 = scmp.lt.u32.totalorder %s1537_s29, %s1895_s24 }
 0x608   : > { %p1539_p12 = pnand %p1538_p11, %p1703_p4 }
 0x609   : > { %p1544_p2 = por %p1543_p1, %p1542_p0 }
 0x60a   : > { %p1540_p13 = pneg %p1539_p12 }
 0x60b   : > { %p1546_p5 = por %p1545_p3, %p1544_p2 }
 0x60d   : > { %p1547_p6 = pnand %p1546_p5, %p1540_p13 }
 0x60f   : > { %1550 = shalt.err (!%p1547_p6)
}
 0x610   : > { %1407 = dma.vmem_to_hbm [thread:$0]  (%p1703_p4), %s1897_s20, 128, %s1895_s24, %s1095_s12  }
 0x611 PF: > { %p1418_p7 = scmp.ge.s32.totalorder %s1605_s14, 2  ;;  %s1143_s18 = sand.u32 1, %s1585_s30  }
 0x612   : > { %s1144_s27 = scalar_lea.sflag [#allocation3], %s1143_s18 }
 0x613   : > { %p1412_p9 = pnand %p1418_p7, %p1710_p8 }
 0x615   : > { %1576 = dma.done.wait (!%p1412_p9), %s1144_s27, 128  }
 0x616   : > { %1578 = vsyncadd (!%p1412_p9), %s1144_s27, 4294967168  ;;  %s1153_s28 = scalar_lea.sflag [#allocation5], %s1143_s18 }
 0x617   : > { %1580 = dma.done.wait (!%p1412_p9), %s1153_s28, 256  }
 0x618   : > { %1582 = vsyncadd (!%p1412_p9), %s1153_s28, 4294967040  ;;  %s26_s14 = sadd.s32 1, %s1605_s14   ;;  %s1957_s30 = smov %s1589_s10 }
 0x619   : > { %p23_p10 = scmp.ge.s32.totalorder %s26_s14, 4   ;;  %s1958_s10 = smov %s1593_s11 }
 0x61a   : > { %s1959_s11 = smov %s1716_s22  ;;  %s1960_s12 = smov %s1601_s13 }
 0x61b   : > { %s1961_s13 = smov %s1963_s17  ;;  %25 = sbr.rel (!%p23_p10) target bundleno = 6 (0x6), region = 107 }
 0x622   :  { %1158 = vsyncpa [#allocation3], 1 }
 0x623   :  { %1160 = vsyncpa [#allocation3 + $0x1], 1 }
 0x624   :  { %1161 = vsyncpa [#allocation5], 1 }
 0x625   :  { %1163 = vsyncpa [#allocation5 + $0x1], 1 }

</bundles_post_ra>
